<compile_context>
chip_gen: v7x
topology: tpu7x:2x2x1
jax: 0.10.0
libtpu: 0.0.40
codegen_flags: <defaults>
</compile_context>

<pallas_src>
import functools

import jax
import jax.numpy as jnp
from jax.experimental import pallas as pl
from jax.experimental.pallas import tpu as pltpu


def causal_intervention_kernel(
    x_ref, w_ref, ez_ref,
    wbd_ref,      # blockdiag(hd_w1, ez_w1)              : (2D, 2H), bf16
    w2cat_ref,    # 0.5 * concat([hd_w2, ez_w2], axis=0) : (2H, D),  bf16
    g_w1_ref,     # gaze_fc layer 1                      : (D, H),   bf16
    g_w2_ref,     # gaze_fc layer 2 (natural width)      : (H, d_out), bf16
    gaze_ref, gaze_fea_ref,
):
    mdt = wbd_ref.dtype   # matmul operand dtype (bf16); accumulation stays f32

    x = x_ref[...]
    w = w_ref[...]
    ez = ez_ref[...]

    # First layers of hd_layers / Ez_layers fused into ONE block-diagonal matmul:
    #   [x | ez] @ blockdiag(hd_w1, ez_w1) = [x @ hd_w1 | ez @ ez_w1]
    xez = jnp.concatenate([x.astype(mdt), ez.astype(mdt)], axis=-1)        # (tb, 2D)
    h_cat = jnp.maximum(
        jnp.dot(xez, wbd_ref[...], preferred_element_type=jnp.float32), 0.0)

    # Both second layers via K-concat; 0.5 is folded into w2_cat host-side.
    fxez_half = jnp.dot(h_cat.astype(mdt), w2cat_ref[...],
                        preferred_element_type=jnp.float32)                # 0.5*(fx+fez)

    # fusion_mode == 'add'
    gaze_fea = 0.5 * w + fxez_half
    gaze_fea_ref[...] = gaze_fea.astype(gaze_fea_ref.dtype)

    # gaze_fc: Linear -> ReLU -> Linear (no bias, dropout = 0).
    h = jnp.maximum(
        jnp.dot(gaze_fea.astype(mdt), g_w1_ref[...],
                preferred_element_type=jnp.float32), 0.0)
    gaze = jnp.dot(h.astype(mdt), g_w2_ref[...],
                   preferred_element_type=jnp.float32)
    gaze_ref[...] = gaze.astype(gaze_ref.dtype)


def pack_params(params, matmul_dtype=jnp.bfloat16):
    """One-time, host-side weight packing. Call at parameter-load time, NOT per step."""
    d_in, d_hidden = params["hd_w1"].shape
    wbd = jnp.zeros((2 * d_in, 2 * d_hidden), jnp.float32)
    wbd = wbd.at[:d_in, :d_hidden].set(params["hd_w1"])
    wbd = wbd.at[d_in:, d_hidden:].set(params["ez_w1"])
    # Fold the 0.5 into the stacked second-layer weight ONLY (0.5*W stays in-kernel).
    w2_cat = 0.5 * jnp.concatenate([params["hd_w2"], params["ez_w2"]], axis=0)
    cast = lambda a: a.astype(matmul_dtype)
    return {
        "wbd": cast(wbd),
        "w2_cat": cast(w2_cat),
        "g_w1": cast(params["g_w1"]),
        "g_w2": cast(params["g_w2"]),
    }


@functools.partial(jax.jit, static_argnames=("tb",))
def _causal_intervention_packed(x, w, ez, packed, *, tb):
    B, D = x.shape
    d_out_gaze = packed["g_w2"].shape[1]        # static (comes from a shape)
    d_hidden2 = packed["wbd"].shape[1]          # 2 * d_hidden
    d_hidden = d_hidden2 // 2
    n_blocks = pl.cdiv(B, tb)                   # partial last block is masked; rows are
                                                # independent (no biases), so no jnp.pad.

    vmem = pltpu.MemorySpace.VMEM
    act_spec = pl.BlockSpec((tb, D), lambda i: (i, 0), memory_space=vmem)
    # Weights: constant index_map -> stay resident in VMEM, never re-DMA'd per step.
    wt_spec = lambda a: pl.BlockSpec(a.shape, lambda i: (0, 0), memory_space=vmem)

    weights = (packed["wbd"], packed["w2_cat"], packed["g_w1"], packed["g_w2"])

    # Advisory cost estimate so XLA schedules neighbors around this small call.
    flops = 2 * B * (2 * D * d_hidden2 + d_hidden2 * D + D * d_hidden
                     + d_hidden * d_out_gaze)
    bytes_accessed = (4 * B * (3 * D + D + d_out_gaze)
                      + sum(wi.size * wi.dtype.itemsize for wi in weights))
    cost = pl.CostEstimate(flops=flops, transcendentals=0,
                           bytes_accessed=bytes_accessed)

    gaze, gaze_fea = pl.pallas_call(
        causal_intervention_kernel,
        out_shape=(
            jax.ShapeDtypeStruct((B, d_out_gaze), jnp.float32),   # natural width
            jax.ShapeDtypeStruct((B, D), jnp.float32),
        ),
        grid=(n_blocks,),
        in_specs=[act_spec, act_spec, act_spec] + [wt_spec(a) for a in weights],
        out_specs=(
            pl.BlockSpec((tb, d_out_gaze), lambda i: (i, 0), memory_space=vmem),
            pl.BlockSpec((tb, D), lambda i: (i, 0), memory_space=vmem),
        ),
        compiler_params=pltpu.CompilerParams(
            dimension_semantics=("parallel",)),   # batch tiles shard across v7x's 2 TCs
        cost_estimate=cost,
    )(x, w, ez, *weights)
    return gaze, gaze_fea


def causal_intervention(x, w, ez, packed_params, *, tb=None):
    """x, w, ez: (B, D) float32. packed_params: output of pack_params (packed ONCE)."""
    B = x.shape[0]
    if tb is None:
        # Small batches: single block. Large batches: 2048-row tiles (safe under v5e's
        # 16 MiB scoped-VMEM default; pass tb=4096-8192 on v6e/v7x for longer DMAs,
        # raising vmem_limit_bytes if the working set grows).
        tb = min(2048, max(8, ((B + 7) // 8) * 8))
    return _causal_intervention_packed(x, w, ez, packed_params, tb=tb)


# ----------------------------- reference & test harness -----------------------------

def _ref_forward(x, w, ez, p, compute_dtype=jnp.float32):
    """Plain-JAX reference of the PyTorch module (optionally bf16 matmul operands)."""
    c = lambda a: a.astype(compute_dtype)
    mm = lambda a, b: jnp.dot(c(a), c(b), preferred_element_type=jnp.float32)
    relu = lambda a: jnp.maximum(a, 0.0)
    fx = mm(relu(mm(x, p["hd_w1"])), p["hd_w2"])
    fez = mm(relu(mm(ez, p["ez_w1"])), p["ez_w2"])
    gaze_fea = 0.5 * w + 0.5 * (fx + fez)
    gaze = mm(relu(mm(gaze_fea, p["g_w1"])), p["g_w2"])
    return gaze, gaze_fea


def _init_params(key, d_in=32, d_hidden_factor=4, d_out_gaze=2):
    d_hidden = d_hidden_factor * d_in
    ks = jax.random.split(key, 6)
    scale = lambda din: 1.0 / jnp.sqrt(jnp.float32(din))
    return {
        "hd_w1": jax.random.normal(ks[0], (d_in, d_hidden), jnp.float32) * scale(d_in),
        "hd_w2": jax.random.normal(ks[1], (d_hidden, d_in), jnp.float32) * scale(d_hidden),
        "ez_w1": jax.random.normal(ks[2], (d_in, d_hidden), jnp.float32) * scale(d_in),
        "ez_w2": jax.random.normal(ks[3], (d_hidden, d_in), jnp.float32) * scale(d_hidden),
        "g_w1":  jax.random.normal(ks[4], (d_in, d_hidden), jnp.float32) * scale(d_in),
        "g_w2":  jax.random.normal(ks[5], (d_hidden, d_out_gaze), jnp.float32) * scale(d_hidden),
    }


if __name__ == "__main__":
    key = jax.random.PRNGKey(0)
    k_x, k_w, k_ez, k_p = jax.random.split(key, 4)

    B, D = 8, 32
    x = jax.random.normal(k_x, (B, D), jnp.float32)
    w = jax.random.normal(k_w, (B, D), jnp.float32)
    ez = jax.random.normal(k_ez, (B, D), jnp.float32)
    params = _init_params(k_p, d_in=D, d_hidden_factor=4, d_out_gaze=2)

    packed = pack_params(params)          # one-time packing (hoisted out of the hot path)
    gaze, gaze_fea = jax.block_until_ready(causal_intervention(x, w, ez, packed))

    # Correctness: vs a bf16-matched reference (tight) and the full-f32 module (loose,
    # bf16 MXU operands change low-order bits only).
    g_bf, gf_bf = _ref_forward(x, w, ez, params, compute_dtype=jnp.bfloat16)
    g_f32, gf_f32 = _ref_forward(x, w, ez, params, compute_dtype=jnp.float32)
    assert gaze.shape == g_f32.shape and gaze_fea.shape == gf_f32.shape
    assert jnp.allclose(gaze, g_bf, atol=1e-2, rtol=1e-2)
    assert jnp.allclose(gaze_fea, gf_bf, atol=1e-2, rtol=1e-2)
    assert jnp.allclose(gaze, g_f32, atol=5e-2, rtol=5e-2)
    assert jnp.allclose(gaze_fea, gf_f32, atol=5e-2, rtol=5e-2)

    print("KERNEL_OK")
</pallas_src>

<mosaic_0001>
module attributes {stable_mosaic.version = 11 : i64} {
  func.func @causal_intervention_kernel(%arg0: i32, %arg1: memref<8x32xf32, #tpu.memory_space<vmem>>, %arg2: memref<8x32xf32, #tpu.memory_space<vmem>>, %arg3: memref<8x32xf32, #tpu.memory_space<vmem>>, %arg4: memref<64x256xbf16, #tpu.memory_space<vmem>>, %arg5: memref<256x32xbf16, #tpu.memory_space<vmem>>, %arg6: memref<32x128xbf16, #tpu.memory_space<vmem>>, %arg7: memref<128x2xbf16, #tpu.memory_space<vmem>>, %arg8: memref<8x2xf32, #tpu.memory_space<vmem>>, %arg9: memref<8x32xf32, #tpu.memory_space<vmem>>) attributes {dimension_semantics = [#tpu.dimension_semantics<parallel>], iteration_bounds = array<i64: 1>, scalar_prefetch = 0 : i64, scratch_operands = 0 : i64, tpu.core_type = #tpu.core_type<tc>, window_params = [{transform_indices = @transform_0, window_bounds = array<i64: 8, 32>}, {transform_indices = @transform_1, window_bounds = array<i64: 8, 32>}, {transform_indices = @transform_2, window_bounds = array<i64: 8, 32>}, {pipeline_mode = #tpu.pipeline_mode<synchronous>, transform_indices = @transform_3, window_bounds = array<i64: 64, 256>}, {pipeline_mode = #tpu.pipeline_mode<synchronous>, transform_indices = @transform_4, window_bounds = array<i64: 256, 32>}, {pipeline_mode = #tpu.pipeline_mode<synchronous>, transform_indices = @transform_5, window_bounds = array<i64: 32, 128>}, {pipeline_mode = #tpu.pipeline_mode<synchronous>, transform_indices = @transform_6, window_bounds = array<i64: 128, 2>}, {transform_indices = @transform_7, window_bounds = array<i64: 8, 2>}, {transform_indices = @transform_8, window_bounds = array<i64: 8, 32>}]} {
    %c0 = arith.constant 0 : index
    %c0_0 = arith.constant 0 : index
    %0 = vector.load %arg1[%c0, %c0_0] : memref<8x32xf32, #tpu.memory_space<vmem>>, vector<8x32xf32>
    %c0_1 = arith.constant 0 : index
    %c0_2 = arith.constant 0 : index
    %1 = vector.load %arg2[%c0_1, %c0_2] : memref<8x32xf32, #tpu.memory_space<vmem>>, vector<8x32xf32>
    %c0_3 = arith.constant 0 : index
    %c0_4 = arith.constant 0 : index
    %2 = vector.load %arg3[%c0_3, %c0_4] : memref<8x32xf32, #tpu.memory_space<vmem>>, vector<8x32xf32>
    %3 = arith.truncf %0 : vector<8x32xf32> to vector<8x32xbf16>
    %4 = arith.truncf %2 : vector<8x32xf32> to vector<8x32xbf16>
    %5 = tpu.concatenate %3, %4 in 1 : vector<8x32xbf16>, vector<8x32xbf16> -> vector<8x64xbf16>
    %c0_5 = arith.constant 0 : index
    %c0_6 = arith.constant 0 : index
    %6 = vector.load %arg4[%c0_5, %c0_6] : memref<64x256xbf16, #tpu.memory_space<vmem>>, vector<64x256xbf16>
    %cst = arith.constant dense<0.000000e+00> : vector<8x256xf32>
    %7 = tpu.matmul %5, %6, %cst {dimension_numbers = #tpu.dot_dimension_numbers<[1], [0], [0], [1], [0, 0, 1, 1], [], []>} : vector<8x64xbf16>, vector<64x256xbf16>, vector<8x256xf32> -> vector<8x256xf32>
    %cst_7 = arith.constant 0.000000e+00 : f32
    %8 = vector.broadcast %cst_7 : f32 to vector<8x256xf32>
    %9 = arith.maximumf %7, %8 : vector<8x256xf32>
    %10 = arith.truncf %9 : vector<8x256xf32> to vector<8x256xbf16>
    %c0_8 = arith.constant 0 : index
    %c0_9 = arith.constant 0 : index
    %11 = vector.load %arg5[%c0_8, %c0_9] : memref<256x32xbf16, #tpu.memory_space<vmem>>, vector<256x32xbf16>
    %cst_10 = arith.constant dense<0.000000e+00> : vector<8x32xf32>
    %12 = tpu.matmul %10, %11, %cst_10 {dimension_numbers = #tpu.dot_dimension_numbers<[1], [0], [0], [1], [0, 0, 1, 1], [], []>} : vector<8x256xbf16>, vector<256x32xbf16>, vector<8x32xf32> -> vector<8x32xf32>
    %cst_11 = arith.constant 5.000000e-01 : f32
    %13 = vector.broadcast %cst_11 : f32 to vector<8x32xf32>
    %14 = arith.mulf %13, %1 : vector<8x32xf32>
    %15 = arith.addf %14, %12 : vector<8x32xf32>
    %c0_12 = arith.constant 0 : index
    %c0_13 = arith.constant 0 : index
    %16 = vector.load %arg9[%c0_12, %c0_13] : memref<8x32xf32, #tpu.memory_space<vmem>>, vector<8x32xf32>
    tpu.vector_store %arg9[%c0_12, %c0_13], %15 {strides = array<i32>} : memref<8x32xf32, #tpu.memory_space<vmem>>, vector<8x32xf32>,
    %17 = arith.truncf %15 : vector<8x32xf32> to vector<8x32xbf16>
    %c0_14 = arith.constant 0 : index
    %c0_15 = arith.constant 0 : index
    %18 = vector.load %arg6[%c0_14, %c0_15] : memref<32x128xbf16, #tpu.memory_space<vmem>>, vector<32x128xbf16>
    %cst_16 = arith.constant dense<0.000000e+00> : vector<8x128xf32>
    %19 = tpu.matmul %17, %18, %cst_16 {dimension_numbers = #tpu.dot_dimension_numbers<[1], [0], [0], [1], [0, 0, 1, 1], [], []>} : vector<8x32xbf16>, vector<32x128xbf16>, vector<8x128xf32> -> vector<8x128xf32>
    %cst_17 = arith.constant 0.000000e+00 : f32
    %20 = vector.broadcast %cst_17 : f32 to vector<8x128xf32>
    %21 = arith.maximumf %19, %20 : vector<8x128xf32>
    %22 = arith.truncf %21 : vector<8x128xf32> to vector<8x128xbf16>
    %c0_18 = arith.constant 0 : index
    %c0_19 = arith.constant 0 : index
    %23 = vector.load %arg7[%c0_18, %c0_19] : memref<128x2xbf16, #tpu.memory_space<vmem>>, vector<128x2xbf16>
    %cst_20 = arith.constant dense<0.000000e+00> : vector<8x2xf32>
    %24 = tpu.matmul %22, %23, %cst_20 {dimension_numbers = #tpu.dot_dimension_numbers<[1], [0], [0], [1], [0, 0, 1, 1], [], []>} : vector<8x128xbf16>, vector<128x2xbf16>, vector<8x2xf32> -> vector<8x2xf32>
    %c0_21 = arith.constant 0 : index
    %c0_22 = arith.constant 0 : index
    %25 = vector.load %arg8[%c0_21, %c0_22] : memref<8x2xf32, #tpu.memory_space<vmem>>, vector<8x2xf32>
    tpu.vector_store %arg8[%c0_21, %c0_22], %24 {strides = array<i32>} : memref<8x2xf32, #tpu.memory_space<vmem>>, vector<8x2xf32>,
    return
  }
  func.func @transform_0(%arg0: i32) -> (i32, i32) {
    %c0_i32 = arith.constant 0 : i32
    %c0_i32_0 = arith.constant 0 : i32
    return %arg0, %c0_i32 : i32, i32
  }
  func.func @transform_1(%arg0: i32) -> (i32, i32) {
    %c0_i32 = arith.constant 0 : i32
    %c0_i32_0 = arith.constant 0 : i32
    return %arg0, %c0_i32 : i32, i32
  }
  func.func @transform_2(%arg0: i32) -> (i32, i32) {
    %c0_i32 = arith.constant 0 : i32
    %c0_i32_0 = arith.constant 0 : i32
    return %arg0, %c0_i32 : i32, i32
  }
  func.func @transform_3(%arg0: i32) -> (i32, i32) {
    %c0_i32 = arith.constant 0 : i32
    %c0_i32_0 = arith.constant 0 : i32
    %c0_i32_1 = arith.constant 0 : i32
    return %c0_i32, %c0_i32_0 : i32, i32
  }
  func.func @transform_4(%arg0: i32) -> (i32, i32) {
    %c0_i32 = arith.constant 0 : i32
    %c0_i32_0 = arith.constant 0 : i32
    %c0_i32_1 = arith.constant 0 : i32
    return %c0_i32, %c0_i32_0 : i32, i32
  }
  func.func @transform_5(%arg0: i32) -> (i32, i32) {
    %c0_i32 = arith.constant 0 : i32
    %c0_i32_0 = arith.constant 0 : i32
    %c0_i32_1 = arith.constant 0 : i32
    return %c0_i32, %c0_i32_0 : i32, i32
  }
  func.func @transform_6(%arg0: i32) -> (i32, i32) {
    %c0_i32 = arith.constant 0 : i32
    %c0_i32_0 = arith.constant 0 : i32
    %c0_i32_1 = arith.constant 0 : i32
    return %c0_i32, %c0_i32_0 : i32, i32
  }
  func.func @transform_7(%arg0: i32) -> (i32, i32) {
    %c0_i32 = arith.constant 0 : i32
    %c0_i32_0 = arith.constant 0 : i32
    return %arg0, %c0_i32 : i32, i32
  }
  func.func @transform_8(%arg0: i32) -> (i32, i32) {
    %c0_i32 = arith.constant 0 : i32
    %c0_i32_0 = arith.constant 0 : i32
    return %arg0, %c0_i32 : i32, i32
  }
}

</mosaic_0001>

<bundles_post_ra>
// kernel: _causal_intervention_packed.1
= control target key start
LH: loop header
LB: loop body
LE: loop exit
PB: predicated region body
PF: predicated region fallthrough
CT: control target
= control target key end

     0   :  { %v660_v4 = vmov 0   ;;  %s661_s13 = smov 32   ;;  %s841_s0 = inlined_call_operand.vmem [shape: f32[8,32], index: 0, kind: input, shape index: {}]   ;;  %s842_s1 = inlined_call_operand.vmem [shape: f32[8,32], index: 1, kind: input, shape index: {}]   ;;  %s843_s2 = inlined_call_operand.vmem [shape: f32[8,32], index: 2, kind: input, shape index: {}]   ;;  %s844_s3 = inlined_call_operand.vmem [shape: bf16[64,256], index: 3, kind: input, shape index: {}]   ;;  %s845_s4 = inlined_call_operand.vmem [shape: bf16[256,32], index: 4, kind: input, shape index: {}]   ;;  %s846_s5 = inlined_call_operand.vmem [shape: bf16[32,128], index: 5, kind: input, shape index: {}]   ;;  %s847_s6 = inlined_call_operand.vmem [shape: bf16[128,2], index: 6, kind: input, shape index: {}]   ;;  %s848_s7 = inlined_call_operand.vmem [shape: f32[8,2], index: 7, kind: output, shape index: {0}]   ;;  %s849_s8 = inlined_call_operand.hbm [shape: f32[8,32], index: 8, kind: output, shape index: {1}]  }
   0x1   :  { %v32_v0 = vld [vmem:[%s843_s2] sm:$0xff]  ;;  %125 = vmatprep.mubr.bf16.mxu1 %v660_v4  ;;  %v601_v5 = vld [vmem:[%s844_s3 + $0x14] ss:$8 sps:$4 sm:$0xff]   ;;  %v603_v6 = vld [vmem:[%s844_s3 + $0x10] ss:$8 sps:$4 sm:$0xff]  }
   0x2   :  { %v34_v1 = vpack.c.bf16 %v32_v0, %v32_v0  ;;  %v598_v2 = vld [vmem:[%s844_s3 + $0x4] ss:$8 sps:$4 sm:$0xff]   ;;  %v600_v3 = vld [vmem:[%s844_s3] ss:$8 sps:$4 sm:$0xff]   ;;  %v607_v9 = vld [vmem:[%s844_s3 + $0x34] ss:$8 sps:$4 sm:$0xff]  }
   0x3   :  { %93 = vmatprep.subr.bf16.mxu1 %v598_v2  ;;  %v604_v7 = vld [vmem:[%s844_s3 + $0x24] ss:$8 sps:$4 sm:$0xff]   ;;  %v606_v8 = vld [vmem:[%s844_s3 + $0x20] ss:$8 sps:$4 sm:$0xff]   ;;  %v609_v10 = vld [vmem:[%s844_s3 + $0x30] ss:$8 sps:$4 sm:$0xff]  }
   0x4   :  { %36 = vrot.lane.b32.xlu0 %v34_v1, %s661_s13  ;;  %94 = vmatpush1.bf16.msra.mxu1 %v600_v3  ;;  %v610_v11 = vld [vmem:[%s845_s4 + $0x40] sm:$0xff]  }
   0x5   :  { %95 = vmatprep.subr.bf16.mxu1 %v601_v5 }
   0x8   :  { %96 = vmatpush1.bf16.msra.mxu1 %v603_v6 }
   0x9   :  { %97 = vmatprep.subr.bf16.mxu1 %v604_v7 }
   0xc   :  { %98 = vmatpush1.bf16.msra.mxu1 %v606_v8 }
   0xd   :  { %99 = vmatprep.subr.bf16.mxu1 %v607_v9 }
  0x10   :  { %100 = vmatpush1.bf16.msra.mxu1 %v609_v10 }
  0x11   :  { %531 = vmatprep.subr.bf16.mxu1 %v610_v11 }
  0x12   :  { %14 = vsyncpa [#allocation3], 0  ;;  %v30_v12 = vld [vmem:[%s841_s0] sm:$0xff]  ;;  %vm38_vm0 = vcmask 261120   ;;  %vm90_vm1 = vcmask 523264   ;;  %v612_v16 = vld [vmem:[%s845_s4 + $0x48] sm:$0xff]  }
  0x13   :  { %v33_v13 = vpack.c.bf16 %v30_v12, %v30_v12  ;;  %v611_v14 = vld [vmem:[%s845_s4] sm:$0xff]   ;;  %v613_v18 = vld [vmem:[%s845_s4 + $0x8] sm:$0xff]   ;;  %v614_v19 = vld [vmem:[%s845_s4 + $0x50] sm:$0xff]   ;;  %v662_v40 = vmov 0.0   ;;  %vm663_vm2 = vmmov 0   ;;  %s664_s26 = smov [#allocation2]  }
  0x14   :  { %v615_v20 = vld [vmem:[%s845_s4 + $0x10] sm:$0xff]   ;;  %v616_v21 = vld [vmem:[%s845_s4 + $0x58] sm:$0xff]   ;;  %v618_v23 = vld [vmem:[%s845_s4 + $0x60] sm:$0xff]   ;;  %565 = vmatprep.subr.bf16.mxu0 %v662_v40  ;;  %569 = vmatprep.mubr.msk.bf16.mxu0 %vm663_vm2, %v662_v40  ;;  %s485_s27 = sshll.u32 %s664_s26, 4  ;;  %s486_s27 = int_to_ptr.vmem [resolvable:$true] %s485_s27 }
  0x15   :  { %v617_v22 = vld [vmem:[%s845_s4 + $0x18] sm:$0xff]   ;;  %v619_v24 = vld [vmem:[%s845_s4 + $0x20] sm:$0xff]   ;;  %v620_v25 = vld [vmem:[%s845_s4 + $0x68] sm:$0xff]   ;;  %s636_s28 = scalar_lea.vmem %s486_s27, 128  ;;  %p641_p1 = scmp.lt.s32.totalorder %s486_s27, %s486_s27 }
  0x16   :  { %v621_v26 = vld [vmem:[%s845_s4 + $0x28] sm:$0xff]   ;;  %v622_v27 = vld [vmem:[%s845_s4 + $0x70] sm:$0xff]   ;;  %v624_v29 = vld [vmem:[%s845_s4 + $0x78] sm:$0xff]   ;;  %p637_p0 = scmp.ne.s32.totalorder %s486_s27, %s636_s28  ;;  %p642_p2 = scmp.lt.s32.totalorder %s636_s28, %s636_s28 }
  0x17   :  { %v623_v28 = vld [vmem:[%s845_s4 + $0x30] sm:$0xff]   ;;  %v625_v30 = vld [vmem:[%s845_s4 + $0x38] sm:$0xff]   ;;  %v626_v39 = vld [vmem:[%s846_s5] sm:$0xff]  }
  0x18   :  { %566 = vmatpush3.bf16.msra.mxu0 %v626_v39  ;;  %v627_v41 = vld [vmem:[%s846_s5 + $0x8] sm:$0xff]   ;;  %v31_v42 = vld [vmem:[%s842_s1] sm:$0xff]  ;;  %v630_v53 = vld [vmem:[%s847_s6 + $0x10] sm:$0xff]   ;;  %p643_p3 = por %p642_p2, %p641_p1 }
  0x19   :  { %567 = vmatprep.subr.bf16.mxu0 %v662_v40  ;;  %v306_v44 = vmul.f32 0.5, %v31_v42  ;;  %v628_v50 = vld [vmem:[%s847_s6] sm:$0xff]   ;;  %v629_v52 = vld [vmem:[%s847_s6 + $0x8] sm:$0xff]   ;;  %v631_v54 = vld [vmem:[%s847_s6 + $0x18] sm:$0xff]  }
  0x1a   :  { %v632_v55 = vld [vmem:[%s847_s6 + $0x20] sm:$0xff]   ;;  %v633_v56 = vld [vmem:[%s847_s6 + $0x28] sm:$0xff]   ;;  %v634_v57 = vld [vmem:[%s847_s6 + $0x30] sm:$0xff]   ;;  %p644_p4 = pnand %p643_p3, %p637_p0 }
  0x1b   :  { %v635_v58 = vld [vmem:[%s847_s6 + $0x38] sm:$0xff]  }
  0x1c   :  { %568 = vmatpush3.bf16.msra.mxu0 %v627_v41 }
  0x1d   :  { %573 = vmatprep.subr.bf16.mxu0 %v662_v40 }
  0x76   :  { %v37_v15 = vpop.permute.xlu0 %36 }
  0x77   :  { %v41_v17 = vsel %vm38_vm0, %v33_v13, %v37_v15 }
  0x78   :  { %503 = vmatmul.mubr.msk.bf16.vlgmr.msra.gmra.mrb[0].mxu1 %vm90_vm1, %v41_v17 }
  0x79   :  { %532 = vmatpush3.bf16.msra.mxu1 %v611_v14 }
  0x7a   :  { %533 = vmatprep.subr.bf16.mxu1 %v612_v16 }
  0x7d   :  { %534 = vmatpush3.bf16.msra.mxu1 %v613_v18 }
  0x7e   :  { %535 = vmatprep.subr.bf16.mxu1 %v614_v19 }
  0x81   :  { %536 = vmatpush3.bf16.msra.mxu1 %v615_v20 }
  0x82   :  { %537 = vmatprep.subr.bf16.mxu1 %v616_v21 }
  0x85   :  { %538 = vmatpush3.bf16.msra.mxu1 %v617_v22 }
  0x86   :  { %539 = vmatprep.subr.bf16.mxu1 %v618_v23 }
  0x89   :  { %540 = vmatpush3.bf16.msra.mxu1 %v619_v24 }
  0x8a   :  { %541 = vmatprep.subr.bf16.mxu1 %v620_v25 }
  0x8d   :  { %542 = vmatpush3.bf16.msra.mxu1 %v621_v26 }
  0x8e   :  { %543 = vmatprep.subr.bf16.mxu1 %v622_v27 }
  0x91   :  { %544 = vmatpush3.bf16.msra.mxu1 %v623_v28 }
  0x92   :  { %545 = vmatprep.subr.bf16.mxu1 %v624_v29 }
  0x95   :  { %546 = vmatpush3.bf16.msra.mxu1 %v625_v30 }
 0x14b   :  { %v127_v31 = vpop.f32.mrb[0].mxu1 }
 0x14c   :  { %v134_v32 = vmax.f32 %v127_v31, 0.0  ;;  %v129_v33 = vpop.f32.mrb[1].mxu1 }
 0x14d   :  { %v135_v34 = vmax.f32 %v129_v33, 0.0  ;;  %v131_v35 = vpop.f32.mrb[2].mxu1 }
 0x14e   :  { %v132_v36 = vpop.f32.mrb[3].mxu1  ;;  %v136_v38 = vpack.c.bf16 %v134_v32, %v134_v32 }
 0x14f   :  { %v137_v37 = vpack.c.bf16 %v135_v34, %v135_v34 }
 0x151   :  { %298 = vmatprep.mubr.bf16.mxu1 %v137_v37 }
 0x152   :  { %299 = vmatmul.mubr.bf16.vlgmr.msra.gmra.mrb[4].mxu1 %v136_v38 }
 0x225   :  { %v547_v43 = vpop.f32.mrb[4].mxu1 }
 0x226   :  { %v548_v45 = vpop.f32.mrb[5].mxu1 }
 0x227   :  { %v549_v46 = vadd.f32 %v548_v45, %v547_v43  ;;  %v550_v47 = vpop.f32.mrb[6].mxu1 }
 0x228   :  { %v551_v48 = vpop.f32.mrb[7].mxu1 }
 0x229   :  { %v307_v49 = vadd.f32 %v549_v46, %v306_v44 }
 0x22b   :  { %v309_v51 = vpack.c.bf16 %v307_v49, %v307_v49  ;;  %308 = vst.msk [vmem:[#allocation2] sm:$0xff] %vm38_vm0, %v307_v49 }
 0x22d   :  { %570 = vmatmul.mubr.msk.bf16.vlgmr.msra.gmra.mrb[0].mxu0 %vm38_vm0, %v309_v51 }
 0x22e   :  { %574 = vmatpush3.bf16.msra.mxu0 %v628_v50  ;;  %589 = vmatprep.mubr.msk.bf16.mxu0 %vm663_vm2, %v662_v40 }
 0x22f   :  { %575 = vmatprep.subr.bf16.mxu0 %v662_v40 }
 0x232   :  { %576 = vmatpush3.bf16.msra.mxu0 %v629_v52 }
 0x233   :  { %577 = vmatprep.subr.bf16.mxu0 %v662_v40 }
 0x236   :  { %578 = vmatpush3.bf16.msra.mxu0 %v630_v53 }
 0x237   :  { %579 = vmatprep.subr.bf16.mxu0 %v662_v40 }
 0x23a   :  { %580 = vmatpush3.bf16.msra.mxu0 %v631_v54 }
 0x23b   :  { %581 = vmatprep.subr.bf16.mxu0 %v662_v40 }
 0x23e   :  { %582 = vmatpush3.bf16.msra.mxu0 %v632_v55 }
 0x23f   :  { %583 = vmatprep.subr.bf16.mxu0 %v662_v40 }
 0x242   :  { %584 = vmatpush3.bf16.msra.mxu0 %v633_v56 }
 0x243   :  { %585 = vmatprep.subr.bf16.mxu0 %v662_v40 }
 0x246   :  { %586 = vmatpush3.bf16.msra.mxu0 %v634_v57 }
 0x247   :  { %587 = vmatprep.subr.bf16.mxu0 %v662_v40 }
 0x24a   :  { %588 = vmatpush3.bf16.msra.mxu0 %v635_v58 }
 0x300   :  { %v363_v59 = vpop.f32.mrb[0].mxu0 }
 0x301   :  { %v369_v60 = vmax.f32 %v363_v59, 0.0  ;;  %v571_v61 = vpop.f32.mrb[1].mxu0 }
 0x302   :  { %v366_v62 = vpop.f32.mrb[2].mxu0 }
 0x303   :  { %v370_v63 = vpack.c.bf16 %v369_v60, %v369_v60  ;;  %v572_v0 = vpop.f32.mrb[3].mxu0 }
 0x305   :  { %590 = vmatmul.mubr.bf16.vlgmr.msra.gmra.mrb[4].mxu0 %v370_v63 }
 0x306   :  { %647 = shalt.err (!%p644_p4)
}
 0x307   :  { %s648_s29 = scalar_lea.hbm %s849_s8, 128 }
 0x308   :  { %p649_p5 = scmp.ne.s32.totalorder %s849_s8, %s648_s29  ;;  %p652_p6 = scmp.lt.u32.totalorder %s648_s29, %s849_s8 }
 0x30a   :  { %p654_p7 = pnand %p652_p6, %p649_p5 }
 0x30c   :  { %657 = shalt.err (!%p654_p7)
}
 0x30d   :  { %488 = dma.vmem_to_hbm [thread:$0]  %s486_s27, 128, %s849_s8, [#allocation3]   ;;  %vm475_vm3 = vcmask 15360  }
 0x3d8   :  { %v469_v1 = vpop.f32.mrb[4].mxu0 }
 0x3d9   :  { %476 = vst.msk [vmem:[%s848_s7] sm:$0xff] %vm475_vm3, %v469_v1  ;;  %v591_v2 = vpop.f32.mrb[5].mxu0 }
 0x3da   :  { %v472_v3 = vpop.f32.mrb[6].mxu0 }
 0x3db   :  { %v592_v4 = vpop.f32.mrb[7].mxu0 }
 0x3dc   :  { %658 = dma.done.wait [#allocation3], 128  }
 0x3dd   :  { %659 = vsyncadd [#allocation3], 4294967168 }
 0x3de   :  { %494 = vsyncpa [#allocation3], 1 }

</bundles_post_ra>
